<compile_context>
chip_gen: v5e
topology: v5e:2x2
jax: 0.10.0
libtpu: 0.0.40
codegen_flags: <defaults>
</compile_context>

<pallas_src>
import functools

import jax
import jax.numpy as jnp
from jax.experimental import pallas as pl
from jax.experimental.pallas import tpu as pltpu


def _transformer_block_kernel(
    xq_ref, xkv_ref,
    wq_ref, bq_ref, wkv_ref, bkv_ref,
    wo_ref, bo_ref, ln1g_ref, ln1b_ref,
    w1_ref, b1_ref, w2_ref, b2_ref, ln2g_ref, ln2b_ref,
    o_ref,
    k_scr, v_scr,
    *, num_heads, cache_kv, eps=1e-5,
):
    H = num_heads
    Tq = xq_ref.shape[1]          # query rows handled by this grid step
    S = xkv_ref.shape[1]          # full sequence length (keys / values)
    E = xq_ref.shape[2]
    hd = E // H

    # ---- K/V projection into persistent bf16 VMEM scratch -------------------
    # Full-width fused (S,E)@(E,2E) matmul; when cache_kv, done only at the
    # first query tile of each batch element and reused for the rest.
    def _project_kv():
        kv = jnp.dot(xkv_ref[0], wkv_ref[...],
                     preferred_element_type=jnp.float32) + bkv_ref[...]   # (S, 2E)
        k_scr[...] = kv[:, :E].astype(k_scr.dtype)
        v_scr[...] = kv[:, E:].astype(v_scr.dtype)

    if cache_kv:
        @pl.when(pl.program_id(1) == 0)
        def _():
            _project_kv()
    else:
        _project_kv()

    # Residual path kept in f32; MXU operands cast to bf16 (f32 accumulation).
    x_f32 = xq_ref[0].astype(jnp.float32)                    # (Tq, E)
    x_bf = xq_ref[0].astype(jnp.bfloat16)                    # (Tq, E)

    # ---- Q projection (softmax scale folded into Wq/bq), full MXU width -----
    q = jnp.dot(x_bf, wq_ref[...],
                preferred_element_type=jnp.float32) + bq_ref[...]        # (Tq, E)

    # ---- per-head attention using cached K/V (static lane slices) -----------
    ctx_parts = []
    for h in range(H):
        lo = h * hd
        qh = q[:, lo:lo + hd].astype(jnp.bfloat16)           # (Tq, hd)
        kh = k_scr[:, lo:lo + hd]                            # (S, hd) bf16
        vh = v_scr[:, lo:lo + hd]                            # (S, hd) bf16
        s = jnp.einsum("qd,kd->qk", qh, kh,
                       preferred_element_type=jnp.float32)   # (Tq, S)
        s = s - jnp.max(s, axis=-1, keepdims=True)
        p = jnp.exp(s)
        p = p * pl.reciprocal(jnp.sum(p, axis=-1, keepdims=True), approx=True)
        ctx_parts.append(jnp.dot(p.astype(jnp.bfloat16), vh,
                                 preferred_element_type=jnp.float32))    # (Tq, hd)
    ctx = jnp.concatenate(ctx_parts, axis=-1)                # (Tq, E) f32

    # ---- output projection: single full-width matmul on concat-head ctx -----
    attn = jnp.dot(ctx.astype(jnp.bfloat16), wo_ref[...],
                   preferred_element_type=jnp.float32) + bo_ref[...]     # (Tq, E)

    # ---- residual + LayerNorm 1 (f32) ----------------------------------------
    y = x_f32 + attn
    mu = jnp.mean(y, axis=-1, keepdims=True)
    var = jnp.mean((y - mu) ** 2, axis=-1, keepdims=True)
    y = (y - mu) * jax.lax.rsqrt(var + eps)
    y = y * ln1g_ref[...] + ln1b_ref[...]

    # ---- feed-forward (bf16 MXU operands, f32 accumulation / bias / ReLU) ----
    h1 = jnp.dot(y.astype(jnp.bfloat16), w1_ref[...],
                 preferred_element_type=jnp.float32) + b1_ref[...]       # (Tq, 4E)
    h1 = jnp.maximum(h1, 0.0)
    ff = jnp.dot(h1.astype(jnp.bfloat16), w2_ref[...],
                 preferred_element_type=jnp.float32) + b2_ref[...]       # (Tq, E)

    # ---- residual + LayerNorm 2 (f32) ----------------------------------------
    z = y + ff
    mu2 = jnp.mean(z, axis=-1, keepdims=True)
    var2 = jnp.mean((z - mu2) ** 2, axis=-1, keepdims=True)
    z = (z - mu2) * jax.lax.rsqrt(var2 + eps)
    z = z * ln2g_ref[...] + ln2b_ref[...]

    o_ref[0] = z.astype(o_ref.dtype)


def _vmem_bytes_estimate(S, E, Tq):
    """Rough VMEM residency (bytes) for a given query tile Tq."""
    bf16, f32 = 2, 4
    weights = 12 * E * E * bf16            # wq + wkv + wo + w1 + w2 (single-buffered)
    small = 16 * E * f32                   # biases / LN params
    kv_scratch = 2 * S * E * bf16          # persistent K/V scratch
    xkv_in = 2 * S * E * bf16              # double-buffered bf16 KV operand
    xq_in = 2 * Tq * E * f32               # double-buffered query/residual block
    out_buf = 2 * Tq * E * f32             # double-buffered output block
    scores = 2 * Tq * S * f32              # live score tiles (per-head, a couple live)
    ffn_hidden = Tq * 4 * E * f32
    act_misc = 6 * Tq * E * f32            # q, ctx, y, z, temporaries
    return (weights + small + kv_scratch + xkv_in + xq_in + out_buf
            + scores + ffn_hidden + act_misc)


def _choose_tile_and_vmem(S, E):
    """Generation-aware query tile + vmem limit (64 MiB v7x vs 128 MiB v5e/v6e)."""
    cap = 64 * 1024 * 1024
    try:
        info = pltpu.get_tpu_info()
        cap = int(getattr(info, "vmem_capacity_bytes", 0)) or cap
    except Exception:
        pass
    budget = int(cap * 0.75)
    cands = sorted({t for t in (2048, 1024, 512, 256, 128, 64, 32, 16, 8)
                    if S % t == 0} | {S}, reverse=True)
    tq = cands[-1]
    for t in cands:
        if _vmem_bytes_estimate(S, E, t) <= budget:
            tq = t
            break
    vmem_limit = min(int(cap * 0.9), cap - 2 * 1024 * 1024)
    return tq, vmem_limit


def transformer_block(x, params, *, num_heads):
    """x: (B, S, E) float32.  params: dict of weights in PyTorch conventions."""
    B, S, E = x.shape
    H = num_heads
    assert E % H == 0, "embed_dim must be divisible by num_heads"
    hd = E // H
    scale = 1.0 / (hd ** 0.5)
    wdt = jnp.bfloat16  # MXU operand dtype (accumulation stays f32)

    # ---- host-side weight preparation (PyTorch layout -> kernel layout) -----
    in_w = params["in_proj_weight"].astype(jnp.float32)   # (3E, E), rows = [q;k;v]
    in_b = params["in_proj_bias"].astype(jnp.float32)     # (3E,)

    wq = (in_w[0 * E:1 * E].T * scale).astype(wdt)                 # (E, E), scale folded
    wkv = jnp.concatenate([in_w[1 * E:2 * E].T,
                           in_w[2 * E:3 * E].T], axis=1).astype(wdt)  # (E, 2E)
    bq = (in_b[0 * E:1 * E] * scale)[None, :]                      # (1, E) f32
    bkv = in_b[1 * E:3 * E][None, :]                               # (1, 2E) f32

    wo = params["out_proj_weight"].astype(jnp.float32).T.astype(wdt)   # (E, E)
    bo = params["out_proj_bias"].astype(jnp.float32)[None, :]          # (1, E)

    ln1g = params["ln1_weight"].astype(jnp.float32)[None, :]
    ln1b = params["ln1_bias"].astype(jnp.float32)[None, :]
    w1 = params["ff1_weight"].astype(jnp.float32).T.astype(wdt)        # (E, 4E)
    b1 = params["ff1_bias"].astype(jnp.float32)[None, :]               # (1, 4E)
    w2 = params["ff2_weight"].astype(jnp.float32).T.astype(wdt)        # (4E, E)
    b2 = params["ff2_bias"].astype(jnp.float32)[None, :]               # (1, E)
    ln2g = params["ln2_weight"].astype(jnp.float32)[None, :]
    ln2b = params["ln2_bias"].astype(jnp.float32)[None, :]

    # bf16 copy of x for the K/V path (halves HBM traffic / VMEM residency);
    # the query/residual path keeps f32.
    x_kv = x.astype(jnp.bfloat16)

    # ---- grid / specs --------------------------------------------------------
    Tq, vmem_limit = _choose_tile_and_vmem(S, E)
    n_q = S // Tq
    grid = (B, n_q)

    # Cache K/V across query tiles (s axis "arbitrary") except when B == 1 with
    # multiple tiles: then make s "parallel" so both v7x TensorCores get work,
    # at the cost of recomputing K/V per tile.
    cache_kv = (B > 1) or (n_q == 1)
    s_sem = "arbitrary" if cache_kv else "parallel"

    vmem_const = pl.BlockSpec(memory_space=pltpu.MemorySpace.VMEM)  # single-buffered

    in_specs = [
        pl.BlockSpec((1, Tq, E), lambda b, s: (b, s, 0)),   # x: query rows / residual
        pl.BlockSpec((1, S, E), lambda b, s: (b, 0, 0)),    # x (bf16): full seq for K/V
        vmem_const, vmem_const,   # wq, bq
        vmem_const, vmem_const,   # wkv, bkv
        vmem_const, vmem_const,   # wo, bo
        vmem_const, vmem_const,   # ln1g, ln1b
        vmem_const, vmem_const,   # w1, b1
        vmem_const, vmem_const,   # w2, b2
        vmem_const, vmem_const,   # ln2g, ln2b
    ]

    kernel = functools.partial(_transformer_block_kernel,
                               num_heads=H, cache_kv=cache_kv)

    return pl.pallas_call(
        kernel,
        out_shape=jax.ShapeDtypeStruct((B, S, E), x.dtype),
        grid=grid,
        in_specs=in_specs,
        out_specs=pl.BlockSpec((1, Tq, E), lambda b, s: (b, s, 0)),
        scratch_shapes=[
            pltpu.VMEM((S, E), jnp.bfloat16),   # K cache (persists across query tiles)
            pltpu.VMEM((S, E), jnp.bfloat16),   # V cache
        ],
        compiler_params=pltpu.CompilerParams(
            dimension_semantics=("parallel", s_sem),
            vmem_limit_bytes=vmem_limit,
        ),
    )(x, x_kv, wq, bq, wkv, bkv, wo, bo,
      ln1g, ln1b, w1, b1, w2, b2, ln2g, ln2b)


def init_params(key, embed_dim):
    E = embed_dim
    ks = jax.random.split(key, 6)
    s = 0.02
    return {
        "in_proj_weight": jax.random.normal(ks[0], (3 * E, E), jnp.float32) * s,
        "in_proj_bias": jnp.zeros((3 * E,), jnp.float32),
        "out_proj_weight": jax.random.normal(ks[1], (E, E), jnp.float32) * s,
        "out_proj_bias": jnp.zeros((E,), jnp.float32),
        "ln1_weight": jnp.ones((E,), jnp.float32),
        "ln1_bias": jnp.zeros((E,), jnp.float32),
        "ff1_weight": jax.random.normal(ks[2], (4 * E, E), jnp.float32) * s,
        "ff1_bias": jax.random.normal(ks[3], (4 * E,), jnp.float32) * s,
        "ff2_weight": jax.random.normal(ks[4], (E, 4 * E), jnp.float32) * s,
        "ff2_bias": jax.random.normal(ks[5], (E,), jnp.float32) * s,
        "ln2_weight": jnp.ones((E,), jnp.float32),
        "ln2_bias": jnp.zeros((E,), jnp.float32),
    }


if __name__ == "__main__":
    B, S, E, H = 2, 8, 32, 4

    key = jax.random.PRNGKey(0)
    kx, kp = jax.random.split(key)
    x = jax.random.normal(kx, (B, S, E), jnp.float32)
    params = init_params(kp, E)

    out = transformer_block(x, params, num_heads=H)
    jax.block_until_ready(out)
    assert out.shape == (B, S, E)
    assert bool(jnp.all(jnp.isfinite(out)))
    print("KERNEL_OK")
</pallas_src>

<mosaic_0001>
module attributes {stable_mosaic.version = 11 : i64} {
  func.func @_transformer_block_kernel(%arg0: i32, %arg1: i32, %arg2: memref<1x8x32xf32, #tpu.memory_space<vmem>>, %arg3: memref<1x8x32xbf16, #tpu.memory_space<vmem>>, %arg4: memref<32x32xbf16, #tpu.memory_space<vmem>>, %arg5: memref<1x32xf32, #tpu.memory_space<vmem>>, %arg6: memref<32x64xbf16, #tpu.memory_space<vmem>>, %arg7: memref<1x64xf32, #tpu.memory_space<vmem>>, %arg8: memref<32x32xbf16, #tpu.memory_space<vmem>>, %arg9: memref<1x32xf32, #tpu.memory_space<vmem>>, %arg10: memref<1x32xf32, #tpu.memory_space<vmem>>, %arg11: memref<1x32xf32, #tpu.memory_space<vmem>>, %arg12: memref<32x128xbf16, #tpu.memory_space<vmem>>, %arg13: memref<1x128xf32, #tpu.memory_space<vmem>>, %arg14: memref<128x32xbf16, #tpu.memory_space<vmem>>, %arg15: memref<1x32xf32, #tpu.memory_space<vmem>>, %arg16: memref<1x32xf32, #tpu.memory_space<vmem>>, %arg17: memref<1x32xf32, #tpu.memory_space<vmem>>, %arg18: memref<1x8x32xf32, #tpu.memory_space<vmem>>, %arg19: memref<8x32xbf16, #tpu.memory_space<vmem>>, %arg20: memref<8x32xbf16, #tpu.memory_space<vmem>>) attributes {dimension_semantics = [#tpu.dimension_semantics<parallel>, #tpu.dimension_semantics<arbitrary>], iteration_bounds = array<i64: 2, 1>, scalar_prefetch = 0 : i64, scratch_operands = 2 : i64, tpu.core_type = #tpu.core_type<tc>, window_params = [{transform_indices = @transform_0, window_bounds = array<i64: 1, 8, 32>}, {transform_indices = @transform_1, window_bounds = array<i64: 1, 8, 32>}, {pipeline_mode = #tpu.pipeline_mode<synchronous>, transform_indices = @transform_2, window_bounds = array<i64: 32, 32>}, {pipeline_mode = #tpu.pipeline_mode<synchronous>, transform_indices = @transform_3, window_bounds = array<i64: 1, 32>}, {pipeline_mode = #tpu.pipeline_mode<synchronous>, transform_indices = @transform_4, window_bounds = array<i64: 32, 64>}, {pipeline_mode = #tpu.pipeline_mode<synchronous>, transform_indices = @transform_5, window_bounds = array<i64: 1, 64>}, {pipeline_mode = #tpu.pipeline_mode<synchronous>, transform_indices = @transform_6, window_bounds = array<i64: 32, 32>}, {pipeline_mode = #tpu.pipeline_mode<synchronous>, transform_indices = @transform_7, window_bounds = array<i64: 1, 32>}, {pipeline_mode = #tpu.pipeline_mode<synchronous>, transform_indices = @transform_8, window_bounds = array<i64: 1, 32>}, {pipeline_mode = #tpu.pipeline_mode<synchronous>, transform_indices = @transform_9, window_bounds = array<i64: 1, 32>}, {pipeline_mode = #tpu.pipeline_mode<synchronous>, transform_indices = @transform_10, window_bounds = array<i64: 32, 128>}, {pipeline_mode = #tpu.pipeline_mode<synchronous>, transform_indices = @transform_11, window_bounds = array<i64: 1, 128>}, {pipeline_mode = #tpu.pipeline_mode<synchronous>, transform_indices = @transform_12, window_bounds = array<i64: 128, 32>}, {pipeline_mode = #tpu.pipeline_mode<synchronous>, transform_indices = @transform_13, window_bounds = array<i64: 1, 32>}, {pipeline_mode = #tpu.pipeline_mode<synchronous>, transform_indices = @transform_14, window_bounds = array<i64: 1, 32>}, {pipeline_mode = #tpu.pipeline_mode<synchronous>, transform_indices = @transform_15, window_bounds = array<i64: 1, 32>}, {transform_indices = @transform_16, window_bounds = array<i64: 1, 8, 32>}]} {
    %c0_i32 = arith.constant 0 : i32
    %0 = arith.cmpi eq, %arg1, %c0_i32 : i32
    %1 = arith.extui %0 : i1 to i32
    %c0_i32_0 = arith.constant 0 : i32
    %2 = arith.cmpi ne, %1, %c0_i32_0 : i32
    scf.if %2 {
      %c0_76 = arith.constant 0 : index
      %c0_77 = arith.constant 0 : index
      %c0_78 = arith.constant 0 : index
      %155 = vector.load %arg3[%c0_76, %c0_77, %c0_78] : memref<1x8x32xbf16, #tpu.memory_space<vmem>>, vector<1x8x32xbf16>
      %156 = vector.shape_cast %155 : vector<1x8x32xbf16> to vector<8x32xbf16>
      %c0_79 = arith.constant 0 : index
      %c0_80 = arith.constant 0 : index
      %157 = vector.load %arg6[%c0_79, %c0_80] : memref<32x64xbf16, #tpu.memory_space<vmem>>, vector<32x64xbf16>
      %cst_81 = arith.constant dense<0.000000e+00> : vector<8x64xf32>
      %158 = tpu.matmul %156, %157, %cst_81 {dimension_numbers = #tpu.dot_dimension_numbers<[1], [0], [0], [1], [0, 0, 1, 1], [], []>} : vector<8x32xbf16>, vector<32x64xbf16>, vector<8x64xf32> -> vector<8x64xf32>
      %c0_82 = arith.constant 0 : index
      %c0_83 = arith.constant 0 : index
      %159 = vector.load %arg7[%c0_82, %c0_83] : memref<1x64xf32, #tpu.memory_space<vmem>>, vector<1x64xf32>
      %160 = vector.broadcast %159 : vector<1x64xf32> to vector<8x64xf32>
      %161 = arith.addf %158, %160 : vector<8x64xf32>
      %162 = vector.extract_strided_slice %161 {offsets = [0, 0], sizes = [8, 32], strides = [1, 1]} : vector<8x64xf32> to vector<8x32xf32>
      %163 = arith.truncf %162 : vector<8x32xf32> to vector<8x32xbf16>
      %c0_84 = arith.constant 0 : index
      %c0_85 = arith.constant 0 : index
      %164 = vector.load %arg19[%c0_84, %c0_85] : memref<8x32xbf16, #tpu.memory_space<vmem>>, vector<8x32xbf16>
      tpu.vector_store %arg19[%c0_84, %c0_85], %163 {strides = array<i32>} : memref<8x32xbf16, #tpu.memory_space<vmem>>, vector<8x32xbf16>,
      %165 = vector.extract_strided_slice %161 {offsets = [0, 32], sizes = [8, 32], strides = [1, 1]} : vector<8x64xf32> to vector<8x32xf32>
      %166 = arith.truncf %165 : vector<8x32xf32> to vector<8x32xbf16>
      %c0_86 = arith.constant 0 : index
      %c0_87 = arith.constant 0 : index
      %167 = vector.load %arg20[%c0_86, %c0_87] : memref<8x32xbf16, #tpu.memory_space<vmem>>, vector<8x32xbf16>
      tpu.vector_store %arg20[%c0_86, %c0_87], %166 {strides = array<i32>} : memref<8x32xbf16, #tpu.memory_space<vmem>>, vector<8x32xbf16>,
    } else {
    }
    %c0 = arith.constant 0 : index
    %c0_1 = arith.constant 0 : index
    %c0_2 = arith.constant 0 : index
    %3 = vector.load %arg2[%c0, %c0_1, %c0_2] : memref<1x8x32xf32, #tpu.memory_space<vmem>>, vector<1x8x32xf32>
    %4 = vector.shape_cast %3 : vector<1x8x32xf32> to vector<8x32xf32>
    %c0_3 = arith.constant 0 : index
    %c0_4 = arith.constant 0 : index
    %c0_5 = arith.constant 0 : index
    %5 = vector.load %arg2[%c0_3, %c0_4, %c0_5] : memref<1x8x32xf32, #tpu.memory_space<vmem>>, vector<1x8x32xf32>
    %6 = vector.shape_cast %5 : vector<1x8x32xf32> to vector<8x32xf32>
    %7 = arith.truncf %6 : vector<8x32xf32> to vector<8x32xbf16>
    %c0_6 = arith.constant 0 : index
    %c0_7 = arith.constant 0 : index
    %8 = vector.load %arg4[%c0_6, %c0_7] : memref<32x32xbf16, #tpu.memory_space<vmem>>, vector<32x32xbf16>
    %cst = arith.constant dense<0.000000e+00> : vector<8x32xf32>
    %9 = tpu.matmul %7, %8, %cst {dimension_numbers = #tpu.dot_dimension_numbers<[1], [0], [0], [1], [0, 0, 1, 1], [], []>} : vector<8x32xbf16>, vector<32x32xbf16>, vector<8x32xf32> -> vector<8x32xf32>
    %c0_8 = arith.constant 0 : index
    %c0_9 = arith.constant 0 : index
    %10 = vector.load %arg5[%c0_8, %c0_9] : memref<1x32xf32, #tpu.memory_space<vmem>>, vector<1x32xf32>
    %11 = vector.broadcast %10 : vector<1x32xf32> to vector<8x32xf32>
    %12 = arith.addf %9, %11 : vector<8x32xf32>
    %13 = vector.extract_strided_slice %12 {offsets = [0, 0], sizes = [8, 8], strides = [1, 1]} : vector<8x32xf32> to vector<8x8xf32>
    %14 = arith.truncf %13 : vector<8x8xf32> to vector<8x8xbf16>
    %c0_10 = arith.constant 0 : index
    %c0_11 = arith.constant 0 : index
    %15 = vector.load %arg19[%c0_10, %c0_11] : memref<8x32xbf16, #tpu.memory_space<vmem>>, vector<8x8xbf16>
    %c0_12 = arith.constant 0 : index
    %c0_13 = arith.constant 0 : index
    %16 = vector.load %arg20[%c0_12, %c0_13] : memref<8x32xbf16, #tpu.memory_space<vmem>>, vector<8x8xbf16>
    "tpu.trace_start"() <{level = 10 : i32, message = "qd,kd->qk"}> : () -> ()
    %cst_14 = arith.constant dense<0.000000e+00> : vector<8x8xf32>
    %17 = tpu.matmul %14, %15, %cst_14 {dimension_numbers = #tpu.dot_dimension_numbers<[1], [1], [0], [0], [0, 0, 1, 0], [], []>} : vector<8x8xbf16>, vector<8x8xbf16>, vector<8x8xf32> -> vector<8x8xf32>
    "tpu.trace_stop"() : () -> ()
    %cst_15 = arith.constant dense<0xFF800000> : vector<8xf32>
    %18 = vector.multi_reduction <maximumf>, %17, %cst_15 [1] : vector<8x8xf32> to vector<8xf32>
    %19 = vector.shape_cast %18 : vector<8xf32> to vector<8x1xf32>
    %20 = vector.broadcast %19 : vector<8x1xf32> to vector<8x8xf32>
    %21 = arith.subf %17, %20 : vector<8x8xf32>
    %22 = math.exp %21 : vector<8x8xf32>
    %cst_16 = arith.constant dense<0.000000e+00> : vector<8xf32>
    %23 = vector.multi_reduction <add>, %22, %cst_16 [1] : vector<8x8xf32> to vector<8xf32>
    %24 = vector.shape_cast %23 : vector<8xf32> to vector<8x1xf32>
    %25 = tpu.reciprocal %24 {approx = true} : vector<8x1xf32> -> vector<8x1xf32>
    %26 = vector.broadcast %25 : vector<8x1xf32> to vector<8x8xf32>
    %27 = arith.mulf %22, %26 : vector<8x8xf32>
    %28 = arith.truncf %27 : vector<8x8xf32> to vector<8x8xbf16>
    %cst_17 = arith.constant dense<0.000000e+00> : vector<8x8xf32>
    %29 = tpu.matmul %28, %16, %cst_17 {dimension_numbers = #tpu.dot_dimension_numbers<[1], [0], [0], [1], [0, 0, 1, 1], [], []>} : vector<8x8xbf16>, vector<8x8xbf16>, vector<8x8xf32> -> vector<8x8xf32>
    %30 = vector.extract_strided_slice %12 {offsets = [0, 8], sizes = [8, 8], strides = [1, 1]} : vector<8x32xf32> to vector<8x8xf32>
    %31 = arith.truncf %30 : vector<8x8xf32> to vector<8x8xbf16>
    %c0_18 = arith.constant 0 : index
    %c8 = arith.constant 8 : index
    %32 = vector.load %arg19[%c0_18, %c8] : memref<8x32xbf16, #tpu.memory_space<vmem>>, vector<8x8xbf16>
    %c0_19 = arith.constant 0 : index
    %c8_20 = arith.constant 8 : index
    %33 = vector.load %arg20[%c0_19, %c8_20] : memref<8x32xbf16, #tpu.memory_space<vmem>>, vector<8x8xbf16>
    "tpu.trace_start"() <{level = 10 : i32, message = "qd,kd->qk"}> : () -> ()
    %cst_21 = arith.constant dense<0.000000e+00> : vector<8x8xf32>
    %34 = tpu.matmul %31, %32, %cst_21 {dimension_numbers = #tpu.dot_dimension_numbers<[1], [1], [0], [0], [0, 0, 1, 0], [], []>} : vector<8x8xbf16>, vector<8x8xbf16>, vector<8x8xf32> -> vector<8x8xf32>
    "tpu.trace_stop"() : () -> ()
    %cst_22 = arith.constant dense<0xFF800000> : vector<8xf32>
    %35 = vector.multi_reduction <maximumf>, %34, %cst_22 [1] : vector<8x8xf32> to vector<8xf32>
    %36 = vector.shape_cast %35 : vector<8xf32> to vector<8x1xf32>
    %37 = vector.broadcast %36 : vector<8x1xf32> to vector<8x8xf32>
    %38 = arith.subf %34, %37 : vector<8x8xf32>
    %39 = math.exp %38 : vector<8x8xf32>
    %cst_23 = arith.constant dense<0.000000e+00> : vector<8xf32>
    %40 = vector.multi_reduction <add>, %39, %cst_23 [1] : vector<8x8xf32> to vector<8xf32>
    %41 = vector.shape_cast %40 : vector<8xf32> to vector<8x1xf32>
    %42 = tpu.reciprocal %41 {approx = true} : vector<8x1xf32> -> vector<8x1xf32>
    %43 = vector.broadcast %42 : vector<8x1xf32> to vector<8x8xf32>
    %44 = arith.mulf %39, %43 : vector<8x8xf32>
    %45 = arith.truncf %44 : vector<8x8xf32> to vector<8x8xbf16>
    %cst_24 = arith.constant dense<0.000000e+00> : vector<8x8xf32>
    %46 = tpu.matmul %45, %33, %cst_24 {dimension_numbers = #tpu.dot_dimension_numbers<[1], [0], [0], [1], [0, 0, 1, 1], [], []>} : vector<8x8xbf16>, vector<8x8xbf16>, vector<8x8xf32> -> vector<8x8xf32>
    %47 = vector.extract_strided_slice %12 {offsets = [0, 16], sizes = [8, 8], strides = [1, 1]} : vector<8x32xf32> to vector<8x8xf32>
    %48 = arith.truncf %47 : vector<8x8xf32> to vector<8x8xbf16>
    %c0_25 = arith.constant 0 : index
    %c16 = arith.constant 16 : index
    %49 = vector.load %arg19[%c0_25, %c16] : memref<8x32xbf16, #tpu.memory_space<vmem>>, vector<8x8xbf16>
    %c0_26 = arith.constant 0 : index
    %c16_27 = arith.constant 16 : index
    %50 = vector.load %arg20[%c0_26, %c16_27] : memref<8x32xbf16, #tpu.memory_space<vmem>>, vector<8x8xbf16>
    "tpu.trace_start"() <{level = 10 : i32, message = "qd,kd->qk"}> : () -> ()
    %cst_28 = arith.constant dense<0.000000e+00> : vector<8x8xf32>
    %51 = tpu.matmul %48, %49, %cst_28 {dimension_numbers = #tpu.dot_dimension_numbers<[1], [1], [0], [0], [0, 0, 1, 0], [], []>} : vector<8x8xbf16>, vector<8x8xbf16>, vector<8x8xf32> -> vector<8x8xf32>
    "tpu.trace_stop"() : () -> ()
    %cst_29 = arith.constant dense<0xFF800000> : vector<8xf32>
    %52 = vector.multi_reduction <maximumf>, %51, %cst_29 [1] : vector<8x8xf32> to vector<8xf32>
    %53 = vector.shape_cast %52 : vector<8xf32> to vector<8x1xf32>
    %54 = vector.broadcast %53 : vector<8x1xf32> to vector<8x8xf32>
    %55 = arith.subf %51, %54 : vector<8x8xf32>
    %56 = math.exp %55 : vector<8x8xf32>
    %cst_30 = arith.constant dense<0.000000e+00> : vector<8xf32>
    %57 = vector.multi_reduction <add>, %56, %cst_30 [1] : vector<8x8xf32> to vector<8xf32>
    %58 = vector.shape_cast %57 : vector<8xf32> to vector<8x1xf32>
    %59 = tpu.reciprocal %58 {approx = true} : vector<8x1xf32> -> vector<8x1xf32>
    %60 = vector.broadcast %59 : vector<8x1xf32> to vector<8x8xf32>
    %61 = arith.mulf %56, %60 : vector<8x8xf32>
    %62 = arith.truncf %61 : vector<8x8xf32> to vector<8x8xbf16>
    %cst_31 = arith.constant dense<0.000000e+00> : vector<8x8xf32>
    %63 = tpu.matmul %62, %50, %cst_31 {dimension_numbers = #tpu.dot_dimension_numbers<[1], [0], [0], [1], [0, 0, 1, 1], [], []>} : vector<8x8xbf16>, vector<8x8xbf16>, vector<8x8xf32> -> vector<8x8xf32>
    %64 = vector.extract_strided_slice %12 {offsets = [0, 24], sizes = [8, 8], strides = [1, 1]} : vector<8x32xf32> to vector<8x8xf32>
    %65 = arith.truncf %64 : vector<8x8xf32> to vector<8x8xbf16>
    %c0_32 = arith.constant 0 : index
    %c24 = arith.constant 24 : index
    %66 = vector.load %arg19[%c0_32, %c24] : memref<8x32xbf16, #tpu.memory_space<vmem>>, vector<8x8xbf16>
    %c0_33 = arith.constant 0 : index
    %c24_34 = arith.constant 24 : index
    %67 = vector.load %arg20[%c0_33, %c24_34] : memref<8x32xbf16, #tpu.memory_space<vmem>>, vector<8x8xbf16>
    "tpu.trace_start"() <{level = 10 : i32, message = "qd,kd->qk"}> : () -> ()
    %cst_35 = arith.constant dense<0.000000e+00> : vector<8x8xf32>
    %68 = tpu.matmul %65, %66, %cst_35 {dimension_numbers = #tpu.dot_dimension_numbers<[1], [1], [0], [0], [0, 0, 1, 0], [], []>} : vector<8x8xbf16>, vector<8x8xbf16>, vector<8x8xf32> -> vector<8x8xf32>
    "tpu.trace_stop"() : () -> ()
    %cst_36 = arith.constant dense<0xFF800000> : vector<8xf32>
    %69 = vector.multi_reduction <maximumf>, %68, %cst_36 [1] : vector<8x8xf32> to vector<8xf32>
    %70 = vector.shape_cast %69 : vector<8xf32> to vector<8x1xf32>
    %71 = vector.broadcast %70 : vector<8x1xf32> to vector<8x8xf32>
    %72 = arith.subf %68, %71 : vector<8x8xf32>
    %73 = math.exp %72 : vector<8x8xf32>
    %cst_37 = arith.constant dense<0.000000e+00> : vector<8xf32>
    %74 = vector.multi_reduction <add>, %73, %cst_37 [1] : vector<8x8xf32> to vector<8xf32>
    %75 = vector.shape_cast %74 : vector<8xf32> to vector<8x1xf32>
    %76 = tpu.reciprocal %75 {approx = true} : vector<8x1xf32> -> vector<8x1xf32>
    %77 = vector.broadcast %76 : vector<8x1xf32> to vector<8x8xf32>
    %78 = arith.mulf %73, %77 : vector<8x8xf32>
    %79 = arith.truncf %78 : vector<8x8xf32> to vector<8x8xbf16>
    %cst_38 = arith.constant dense<0.000000e+00> : vector<8x8xf32>
    %80 = tpu.matmul %79, %67, %cst_38 {dimension_numbers = #tpu.dot_dimension_numbers<[1], [0], [0], [1], [0, 0, 1, 1], [], []>} : vector<8x8xbf16>, vector<8x8xbf16>, vector<8x8xf32> -> vector<8x8xf32>
    %81 = tpu.concatenate %29, %46, %63, %80 in 1 : vector<8x8xf32>, vector<8x8xf32>, vector<8x8xf32>, vector<8x8xf32> -> vector<8x32xf32>
    %82 = arith.truncf %81 : vector<8x32xf32> to vector<8x32xbf16>
    %c0_39 = arith.constant 0 : index
    %c0_40 = arith.constant 0 : index
    %83 = vector.load %arg8[%c0_39, %c0_40] : memref<32x32xbf16, #tpu.memory_space<vmem>>, vector<32x32xbf16>
    %cst_41 = arith.constant dense<0.000000e+00> : vector<8x32xf32>
    %84 = tpu.matmul %82, %83, %cst_41 {dimension_numbers = #tpu.dot_dimension_numbers<[1], [0], [0], [1], [0, 0, 1, 1], [], []>} : vector<8x32xbf16>, vector<32x32xbf16>, vector<8x32xf32> -> vector<8x32xf32>
    %c0_42 = arith.constant 0 : index
    %c0_43 = arith.constant 0 : index
    %85 = vector.load %arg9[%c0_42, %c0_43] : memref<1x32xf32, #tpu.memory_space<vmem>>, vector<1x32xf32>
    %86 = vector.broadcast %85 : vector<1x32xf32> to vector<8x32xf32>
    %87 = arith.addf %84, %86 : vector<8x32xf32>
    %88 = arith.addf %4, %87 : vector<8x32xf32>
    %cst_44 = arith.constant dense<0.000000e+00> : vector<8xf32>
    %89 = vector.multi_reduction <add>, %88, %cst_44 [1] : vector<8x32xf32> to vector<8xf32>
    %90 = vector.shape_cast %89 : vector<8xf32> to vector<8x1xf32>
    %cst_45 = arith.constant 3.200000e+01 : f32
    %91 = vector.broadcast %cst_45 : f32 to vector<8x1xf32>
    %92 = arith.divf %90, %91 : vector<8x1xf32>
    %93 = vector.broadcast %92 : vector<8x1xf32> to vector<8x32xf32>
    %94 = arith.subf %88, %93 : vector<8x32xf32>
    %95 = arith.mulf %94, %94 : vector<8x32xf32>
    %cst_46 = arith.constant dense<0.000000e+00> : vector<8xf32>
    %96 = vector.multi_reduction <add>, %95, %cst_46 [1] : vector<8x32xf32> to vector<8xf32>
    %97 = vector.shape_cast %96 : vector<8xf32> to vector<8x1xf32>
    %cst_47 = arith.constant 3.200000e+01 : f32
    %98 = vector.broadcast %cst_47 : f32 to vector<8x1xf32>
    %99 = arith.divf %97, %98 : vector<8x1xf32>
    %100 = vector.broadcast %92 : vector<8x1xf32> to vector<8x32xf32>
    %101 = arith.subf %88, %100 : vector<8x32xf32>
    %cst_48 = arith.constant 9.99999974E-6 : f32
    %102 = vector.broadcast %cst_48 : f32 to vector<8x1xf32>
    %103 = arith.addf %99, %102 : vector<8x1xf32>
    %104 = math.rsqrt %103 : vector<8x1xf32>
    %105 = vector.broadcast %104 : vector<8x1xf32> to vector<8x32xf32>
    %106 = arith.mulf %101, %105 : vector<8x32xf32>
    %c0_49 = arith.constant 0 : index
    %c0_50 = arith.constant 0 : index
    %107 = vector.load %arg10[%c0_49, %c0_50] : memref<1x32xf32, #tpu.memory_space<vmem>>, vector<1x32xf32>
    %108 = vector.broadcast %107 : vector<1x32xf32> to vector<8x32xf32>
    %109 = arith.mulf %106, %108 : vector<8x32xf32>
    %c0_51 = arith.constant 0 : index
    %c0_52 = arith.constant 0 : index
    %110 = vector.load %arg11[%c0_51, %c0_52] : memref<1x32xf32, #tpu.memory_space<vmem>>, vector<1x32xf32>
    %111 = vector.broadcast %110 : vector<1x32xf32> to vector<8x32xf32>
    %112 = arith.addf %109, %111 : vector<8x32xf32>
    %113 = arith.truncf %112 : vector<8x32xf32> to vector<8x32xbf16>
    %c0_53 = arith.constant 0 : index
    %c0_54 = arith.constant 0 : index
    %114 = vector.load %arg12[%c0_53, %c0_54] : memref<32x128xbf16, #tpu.memory_space<vmem>>, vector<32x128xbf16>
    %cst_55 = arith.constant dense<0.000000e+00> : vector<8x128xf32>
    %115 = tpu.matmul %113, %114, %cst_55 {dimension_numbers = #tpu.dot_dimension_numbers<[1], [0], [0], [1], [0, 0, 1, 1], [], []>} : vector<8x32xbf16>, vector<32x128xbf16>, vector<8x128xf32> -> vector<8x128xf32>
    %c0_56 = arith.constant 0 : index
    %c0_57 = arith.constant 0 : index
    %116 = vector.load %arg13[%c0_56, %c0_57] : memref<1x128xf32, #tpu.memory_space<vmem>>, vector<1x128xf32>
    %117 = vector.broadcast %116 : vector<1x128xf32> to vector<8x128xf32>
    %118 = arith.addf %115, %117 : vector<8x128xf32>
    %cst_58 = arith.constant 0.000000e+00 : f32
    %119 = vector.broadcast %cst_58 : f32 to vector<8x128xf32>
    %120 = arith.maximumf %118, %119 : vector<8x128xf32>
    %121 = arith.truncf %120 : vector<8x128xf32> to vector<8x128xbf16>
    %c0_59 = arith.constant 0 : index
    %c0_60 = arith.constant 0 : index
    %122 = vector.load %arg14[%c0_59, %c0_60] : memref<128x32xbf16, #tpu.memory_space<vmem>>, vector<128x32xbf16>
    %cst_61 = arith.constant dense<0.000000e+00> : vector<8x32xf32>
    %123 = tpu.matmul %121, %122, %cst_61 {dimension_numbers = #tpu.dot_dimension_numbers<[1], [0], [0], [1], [0, 0, 1, 1], [], []>} : vector<8x128xbf16>, vector<128x32xbf16>, vector<8x32xf32> -> vector<8x32xf32>
    %c0_62 = arith.constant 0 : index
    %c0_63 = arith.constant 0 : index
    %124 = vector.load %arg15[%c0_62, %c0_63] : memref<1x32xf32, #tpu.memory_space<vmem>>, vector<1x32xf32>
    %125 = vector.broadcast %124 : vector<1x32xf32> to vector<8x32xf32>
    %126 = arith.addf %123, %125 : vector<8x32xf32>
    %127 = arith.addf %112, %126 : vector<8x32xf32>
    %cst_64 = arith.constant dense<0.000000e+00> : vector<8xf32>
    %128 = vector.multi_reduction <add>, %127, %cst_64 [1] : vector<8x32xf32> to vector<8xf32>
    %129 = vector.shape_cast %128 : vector<8xf32> to vector<8x1xf32>
    %cst_65 = arith.constant 3.200000e+01 : f32
    %130 = vector.broadcast %cst_65 : f32 to vector<8x1xf32>
    %131 = arith.divf %129, %130 : vector<8x1xf32>
    %132 = vector.broadcast %131 : vector<8x1xf32> to vector<8x32xf32>
    %133 = arith.subf %127, %132 : vector<8x32xf32>
    %134 = arith.mulf %133, %133 : vector<8x32xf32>
    %cst_66 = arith.constant dense<0.000000e+00> : vector<8xf32>
    %135 = vector.multi_reduction <add>, %134, %cst_66 [1] : vector<8x32xf32> to vector<8xf32>
    %136 = vector.shape_cast %135 : vector<8xf32> to vector<8x1xf32>
    %cst_67 = arith.constant 3.200000e+01 : f32
    %137 = vector.broadcast %cst_67 : f32 to vector<8x1xf32>
    %138 = arith.divf %136, %137 : vector<8x1xf32>
    %139 = vector.broadcast %131 : vector<8x1xf32> to vector<8x32xf32>
    %140 = arith.subf %127, %139 : vector<8x32xf32>
    %cst_68 = arith.constant 9.99999974E-6 : f32
    %141 = vector.broadcast %cst_68 : f32 to vector<8x1xf32>
    %142 = arith.addf %138, %141 : vector<8x1xf32>
    %143 = math.rsqrt %142 : vector<8x1xf32>
    %144 = vector.broadcast %143 : vector<8x1xf32> to vector<8x32xf32>
    %145 = arith.mulf %140, %144 : vector<8x32xf32>
    %c0_69 = arith.constant 0 : index
    %c0_70 = arith.constant 0 : index
    %146 = vector.load %arg16[%c0_69, %c0_70] : memref<1x32xf32, #tpu.memory_space<vmem>>, vector<1x32xf32>
    %147 = vector.broadcast %146 : vector<1x32xf32> to vector<8x32xf32>
    %148 = arith.mulf %145, %147 : vector<8x32xf32>
    %c0_71 = arith.constant 0 : index
    %c0_72 = arith.constant 0 : index
    %149 = vector.load %arg17[%c0_71, %c0_72] : memref<1x32xf32, #tpu.memory_space<vmem>>, vector<1x32xf32>
    %150 = vector.broadcast %149 : vector<1x32xf32> to vector<8x32xf32>
    %151 = arith.addf %148, %150 : vector<8x32xf32>
    %c0_73 = arith.constant 0 : index
    %c0_74 = arith.constant 0 : index
    %c0_75 = arith.constant 0 : index
    %152 = vector.load %arg18[%c0_73, %c0_74, %c0_75] : memref<1x8x32xf32, #tpu.memory_space<vmem>>, vector<1x8x32xf32>
    %153 = vector.shape_cast %152 : vector<1x8x32xf32> to vector<8x32xf32>
    %154 = vector.shape_cast %151 : vector<8x32xf32> to vector<1x8x32xf32>
    tpu.vector_store %arg18[%c0_73, %c0_74, %c0_75], %154 {strides = array<i32>} : memref<1x8x32xf32, #tpu.memory_space<vmem>>, vector<1x8x32xf32>,
    return
  }
  func.func @transform_0(%arg0: i32, %arg1: i32) -> (i32, i32, i32) {
    %c0_i32 = arith.constant 0 : i32
    %c0_i32_0 = arith.constant 0 : i32
    return %arg0, %arg1, %c0_i32 : i32, i32, i32
  }
  func.func @transform_1(%arg0: i32, %arg1: i32) -> (i32, i32, i32) {
    %c0_i32 = arith.constant 0 : i32
    %c0_i32_0 = arith.constant 0 : i32
    %c0_i32_1 = arith.constant 0 : i32
    return %arg0, %c0_i32, %c0_i32_0 : i32, i32, i32
  }
  func.func @transform_2(%arg0: i32, %arg1: i32) -> (i32, i32) {
    %c0_i32 = arith.constant 0 : i32
    %c0_i32_0 = arith.constant 0 : i32
    %c0_i32_1 = arith.constant 0 : i32
    return %c0_i32, %c0_i32_0 : i32, i32
  }
  func.func @transform_3(%arg0: i32, %arg1: i32) -> (i32, i32) {
    %c0_i32 = arith.constant 0 : i32
    %c0_i32_0 = arith.constant 0 : i32
    %c0_i32_1 = arith.constant 0 : i32
    return %c0_i32, %c0_i32_0 : i32, i32
  }
  func.func @transform_4(%arg0: i32, %arg1: i32) -> (i32, i32) {
    %c0_i32 = arith.constant 0 : i32
    %c0_i32_0 = arith.constant 0 : i32
    %c0_i32_1 = arith.constant 0 : i32
    return %c0_i32, %c0_i32_0 : i32, i32
  }
  func.func @transform_5(%arg0: i32, %arg1: i32) -> (i32, i32) {
    %c0_i32 = arith.constant 0 : i32
    %c0_i32_0 = arith.constant 0 : i32
    %c0_i32_1 = arith.constant 0 : i32
    return %c0_i32, %c0_i32_0 : i32, i32
  }
  func.func @transform_6(%arg0: i32, %arg1: i32) -> (i32, i32) {
    %c0_i32 = arith.constant 0 : i32
    %c0_i32_0 = arith.constant 0 : i32
    %c0_i32_1 = arith.constant 0 : i32
    return %c0_i32, %c0_i32_0 : i32, i32
  }
  func.func @transform_7(%arg0: i32, %arg1: i32) -> (i32, i32) {
    %c0_i32 = arith.constant 0 : i32
    %c0_i32_0 = arith.constant 0 : i32
    %c0_i32_1 = arith.constant 0 : i32
    return %c0_i32, %c0_i32_0 : i32, i32
  }
  func.func @transform_8(%arg0: i32, %arg1: i32) -> (i32, i32) {
    %c0_i32 = arith.constant 0 : i32
    %c0_i32_0 = arith.constant 0 : i32
    %c0_i32_1 = arith.constant 0 : i32
    return %c0_i32, %c0_i32_0 : i32, i32
  }
  func.func @transform_9(%arg0: i32, %arg1: i32) -> (i32, i32) {
    %c0_i32 = arith.constant 0 : i32
    %c0_i32_0 = arith.constant 0 : i32
    %c0_i32_1 = arith.constant 0 : i32
    return %c0_i32, %c0_i32_0 : i32, i32
  }
  func.func @transform_10(%arg0: i32, %arg1: i32) -> (i32, i32) {
    %c0_i32 = arith.constant 0 : i32
    %c0_i32_0 = arith.constant 0 : i32
    %c0_i32_1 = arith.constant 0 : i32
    return %c0_i32, %c0_i32_0 : i32, i32
  }
  func.func @transform_11(%arg0: i32, %arg1: i32) -> (i32, i32) {
    %c0_i32 = arith.constant 0 : i32
    %c0_i32_0 = arith.constant 0 : i32
    %c0_i32_1 = arith.constant 0 : i32
    return %c0_i32, %c0_i32_0 : i32, i32
  }
  func.func @transform_12(%arg0: i32, %arg1: i32) -> (i32, i32) {
    %c0_i32 = arith.constant 0 : i32
    %c0_i32_0 = arith.constant 0 : i32
    %c0_i32_1 = arith.constant 0 : i32
    return %c0_i32, %c0_i32_0 : i32, i32
  }
  func.func @transform_13(%arg0: i32, %arg1: i32) -> (i32, i32) {
    %c0_i32 = arith.constant 0 : i32
    %c0_i32_0 = arith.constant 0 : i32
    %c0_i32_1 = arith.constant 0 : i32
    return %c0_i32, %c0_i32_0 : i32, i32
  }
  func.func @transform_14(%arg0: i32, %arg1: i32) -> (i32, i32) {
    %c0_i32 = arith.constant 0 : i32
    %c0_i32_0 = arith.constant 0 : i32
    %c0_i32_1 = arith.constant 0 : i32
    return %c0_i32, %c0_i32_0 : i32, i32
  }
  func.func @transform_15(%arg0: i32, %arg1: i32) -> (i32, i32) {
    %c0_i32 = arith.constant 0 : i32
    %c0_i32_0 = arith.constant 0 : i32
    %c0_i32_1 = arith.constant 0 : i32
    return %c0_i32, %c0_i32_0 : i32, i32
  }
  func.func @transform_16(%arg0: i32, %arg1: i32) -> (i32, i32, i32) {
    %c0_i32 = arith.constant 0 : i32
    %c0_i32_0 = arith.constant 0 : i32
    return %arg0, %arg1, %c0_i32 : i32, i32, i32
  }
}

</mosaic_0001>

<bundles_post_ra>
// kernel: tpu_custom_call.1
= control target key start
LH: loop header
LB: loop body
LE: loop exit
PB: predicated region body
PF: predicated region fallthrough
CT: control target
= control target key end

     0   :  { %s1949_s0 = inlined_call_operand.vmem [shape: f32[2,8,32], index: 0, kind: input, shape index: {}]   ;;  %s1950_s1 = inlined_call_operand.hbm [shape: bf16[2,8,32], index: 1, kind: input, shape index: {}]   ;;  %s1951_s2 = inlined_call_operand.vmem [shape: bf16[32,32], index: 2, kind: input, shape index: {}]   ;;  %s1952_s3 = inlined_call_operand.vmem [shape: f32[1,32], index: 3, kind: input, shape index: {}]   ;;  %s1953_s4 = inlined_call_operand.vmem [shape: bf16[32,64], index: 4, kind: input, shape index: {}]   ;;  %s1954_s5 = inlined_call_operand.vmem [shape: f32[1,64], index: 5, kind: input, shape index: {}]   ;;  %s1955_s6 = inlined_call_operand.vmem [shape: bf16[32,32], index: 6, kind: input, shape index: {}]   ;;  %s1956_s7 = inlined_call_operand.vmem [shape: f32[1,32], index: 7, kind: input, shape index: {}]   ;;  %s1957_s8 = inlined_call_operand.vmem [shape: f32[1,32], index: 8, kind: input, shape index: {}]   ;;  %s1958_s9 = inlined_call_operand.vmem [shape: f32[1,32], index: 9, kind: input, shape index: {}]   ;;  %s1959_s10 = inlined_call_operand.vmem [shape: bf16[32,128], index: 10, kind: input, shape index: {}]   ;;  %s1960_s11 = inlined_call_operand.vmem [shape: f32[1,128], index: 11, kind: input, shape index: {}]   ;;  %s1961_s12 = inlined_call_operand.vmem [shape: bf16[128,32], index: 12, kind: input, shape index: {}]   ;;  %s1962_s13 = inlined_call_operand.vmem [shape: f32[1,32], index: 13, kind: input, shape index: {}]   ;;  %s1963_s14 = inlined_call_operand.vmem [shape: f32[1,32], index: 14, kind: input, shape index: {}]   ;;  %s1964_s15 = inlined_call_operand.vmem [shape: f32[1,32], index: 15, kind: input, shape index: {}]   ;;  %s1965_s16 = inlined_call_operand.hbm [shape: f32[2,8,32], index: 16, kind: output, shape index: {}]  }
   0x1   :  { %1972 = sst [smem:[#allocation15_spill]] %s1949_s0 }
   0x2   :  { %1973 = sst [smem:[#allocation16_spill]] %s1950_s1 }
   0x3   :  { %1974 = sst [smem:[#allocation17_spill]] %s1960_s11 }
   0x4   :  { %1975 = sst [smem:[#allocation18_spill]] %s1962_s13 }
   0x5   :  { %1976 = sst [smem:[#allocation19_spill]] %s1963_s14 }
   0x6   :  { %1977 = sst [smem:[#allocation20_spill]] %s1964_s15 }
   0x7   :  { %1978 = sst [smem:[#allocation21_spill]] %s1965_s16 }
   0x8   :  { %21 = vsyncpa [#allocation5], 0 }
   0x9   :  { %23 = vsyncpa [#allocation5 + $0x1], 0 }
   0xa   :  { %24 = vsyncpa [#allocation6], 0 }
   0xb   :  { %26 = vsyncpa [#allocation6 + $0x1], 0  ;;  %s1692_s21 = smov 0   ;;  %s1694_s22 = smov 0  }
   0xc   :  { %s1696_s23 = smov 0   ;;  %s1698_s24 = smov 0  }
   0xd   :  { %s1700_s25 = smov 0   ;;  %s1702_s26 = smov 0  }
   0xe LB: > { %1979 = sst [smem:[#allocation10_spill]] %s1577_s21  ;;  %s1278_s27 = sadd.s32 4294967295, %s1597_s26   ;;  %s1597_s26 = sphi %s1702_s26, %s32_s26   ;;  %s1593_s25 = sphi %s1700_s25, %s1999_s25   ;;  %s1589_s24 = sphi %s1698_s24, %s1998_s24   ;;  %s1585_s23 = sphi %s1696_s23, %s2002_s23   ;;  %s1581_s22 = sphi %s1694_s22, %s2001_s22   ;;  %s1577_s21 = sphi %s1692_s21, %s2000_s21  }
   0xf   : > { %1980 = sst [smem:[#allocation11_spill]] %s1593_s25  ;;  %s1279_s28 = sadd.s32 4294967294, %s1597_s26  }
  0x10   : > { %s44_s29 = sadd.s32 1, %s1593_s25  ;;  %s79_s30 = sadd.s32 1, %s1585_s23 }
  0x11   : > { %p46_p0 = scmp.ge.s32.totalorder %s44_s29, 2  ;;  %p86_p1 = scmp.ne.s32.totalorder %s1585_s23, %s1581_s22 }
  0x12   : > { %p87_p2 = scmp.eq.s32.totalorder %s1597_s26, 0  ;;  %p92_p3 = scmp.ne.s32.totalorder %s1581_s22, %s1577_s21 }
  0x13   : > { %s2004_s29 = smov (%p46_p0, %s44_s29), 0  ;;  %p93_p5 = scmp.eq.s32.totalorder %s1278_s27, 0 }
  0x14   : > { %1981 = sst [smem:[#allocation12_spill]] %s2004_s29  ;;  %p1733_p4 = por %p87_p2, %p86_p1 }
  0x15   : > { %s76_s17 = ssub.s32 %s1593_s25, %s2004_s29  ;;  %p412_p6 = scmp.eq.s32.totalorder %s1278_s27, 1 }
  0x16   : > { %p77_p7 = scmp.eq.s32.totalorder %s76_s17, 0  ;;  %p1739_p8 = por %p93_p5, %p92_p3 }
  0x17   : > { %p1743_p9 = por %p412_p6, %p86_p1  ;;  %p418_p10 = scmp.eq.s32.totalorder %s1279_s28, 1 }
  0x18   : > { %s1748_s20 = scalar_select %p77_p7, %s1585_s23, %s79_s30  }
  0x19   : > { %s1984_s19 = scalar_select %p1743_p9, 1, 0 }
  0x1a   : > { %1986 = sst [smem:[#allocation14_spill]] %s1748_s20  ;;  %p1750_p11 = por %p418_p10, %p92_p3 }
  0x1b   : > { %1985 = sst [smem:[#allocation13_spill]] %s1984_s19  ;;  %p1281_p12 = scmp.ge.s32.totalorder %s1597_s26, 2 }
  0x1c   : > { %p1396_p13 = scmp.lt.s32.totalorder %s1597_s26, 2  ;;  %s490_s27 = sand.u32 1, %s1585_s23  }
  0x1d   : > { %s1282_s17 = sshll.u32 %s490_s27, 2  ;;  %s1283_s29 = sshll.u32 %s1593_s25, 2 }
  0x1e   : > { %s1988_s1 = sld [smem:[#allocation16_spill]]  ;;  %s494_s13 = scalar_lea.vmem [#allocation4], %s1282_s17 }
  0x1f   : > { %s502_s19 = sshll.u32 %s494_s13, 4  ;;  %p1389_p0 = pnand %p1396_p13, %p1733_p4  ;;  %s503_s19 = int_to_ptr.vmem [resolvable:$true] %s502_s19 }
  0x20   : > { %p1284_p1 = scmp.ge.s32.totalorder %s1597_s26, 1  ;;  %p507_p2 = scmp.lt.s32.totalorder %s1597_s26, 3 }
  0x21   : > { %s491_s28 = scalar_lea.sflag [#allocation5], %s490_s27 }
  0x22   : > { %p508_p3 = pnand %p1284_p1, %p507_p2 }
  0x23   : > { %s1766_s30 = sand.u32 (!%p508_p3), 1, %s1581_s22  }
  0x24   : > { %s498_s14 = scalar_lea.hbm %s1988_s1, %s1283_s29  ;;  %511 = sbr.rel (%p508_p3) target bundleno = 1911 (0x777), region = 84 }
  0x25   : > { %s500_s11 = sshll.u32 %s498_s14, 4  ;;  %s1285_s15 = sshll.u32 (!%p508_p3), %s1766_s30, 2  ;;  %s501_s11 = int_to_ptr.hbm [resolvable:$true] %s500_s11 }
  0x26   : > { %1391 = dma.hbm_to_vmem [thread:$0]  (!%p1389_p0), %s501_s11, 64, %s503_s19, %s491_s28  }
  0x27   : > { %s514_s16 = scalar_lea.sflag (!%p508_p3), [#allocation5], %s1766_s30  ;;  %s517_s13 = scalar_lea.vmem (!%p508_p3), [#allocation4], %s1285_s15 }
  0x29   : > { %1568 = dma.done.wait (%p1739_p8), %s514_s16, 64  }
  0x2a   : > { %1570 = vsyncadd (%p1739_p8), %s514_s16, 4294967232  ;;  %p574_p4 = scmp.lt.s32.totalorder %s1589_s24, 1  ;;  %s1989_s19 = sld [smem:[#allocation15_spill]]  ;;  %v1369_v0 = vld [vmem:[%s1953_s4 + $0x8] sm:$0xff]  ;;  %v1368_v2 = vld [vmem:[%s1953_s4] sm:$0xff]  ;;  %vm607_vm0 = vcmask 261120  }
  0x2b   : > { %v1371_v1 = vld [vmem:[%s1951_s2 + $0x8] sm:$0xff]  ;;  %v1370_v3 = vld [vmem:[%s1951_s2] sm:$0xff]  ;;  %617 = vmatpush.bf16.msra.mxu0 %v1369_v0  ;;  %vm625_vm1 = vcmask 257024   ;;  %vm674_vm2 = vcmask 64512   ;;  %s1601_s29 = smov 120   ;;  %s1602_s0 = smov 96  }
  0x2c   : > { %s575_s11 = scalar_select %p574_p4, %s1589_s24, 1  ;;  %664 = vmatpush.bf16.msra.mxu1 %v1371_v1  ;;  %v586_v6 = vld [vmem:[%s517_s13] sm:$0xf]  ;;  %v1454_v7 = vld [vmem:[%s1954_s5] ss:$0 sm:$0xff]  ;;  %vm709_vm3 = vcmask 1043456  }
  0x2d   : > { %v1455_v8 = vld [vmem:[%s1952_s3] ss:$0 sm:$0xff]  ;;  %s1599_s13 = smov 112   ;;  %s1605_s17 = smov 16   ;;  %vm932_vm4 = vcmask 130048   ;;  %vm934_vm5 = vcmask 195584  }
  0x2e   : > { %s1287_s14 = sshll.u32 %s575_s11, 3  ;;  %s1990_s18 = sld [smem:[#allocation17_spill]] }
  0x2f   : > { %618 = vmatpush.bf16.msra.mxu0 %v1368_v2  ;;  %s1991_s25 = sld [smem:[#allocation18_spill]]  ;;  %s1286_s20 = sshll.u32 %s1766_s30, 3 }
  0x30   : > { %s580_s27 = scalar_lea.vmem %s1989_s19, %s1287_s14  ;;  %665 = vmatpush.bf16.msra.mxu1 %v1370_v3  ;;  %s1600_s14 = smov 104  }
  0x31   : > { %v1791_v4 = vld [vmem:[%s580_s27] sm:$0xff]  ;;  %s1603_s19 = smov 8   ;;  %s1604_s27 = smov 24  }
  0x32   : > { %v633_v5 = vpack.c.bf16 %v1791_v4, %v1791_v4  ;;  %1296 = vmatmul.msk.bf16.vlgmr.msra.gmra.mxu0 %vm607_vm0, %v586_v6  ;;  %s1365_s11 = sshll.u32 %s1589_s24, 3  ;;  %s1995_s16 = sld [smem:[#allocation20_spill]] }
  0x33   : > { %s573_s24 = scalar_lea.vmem [#allocation7], %s1286_s20 }
  0x34   : > { %1305 = vmatmul.msk.bf16.vlgmr.msra.gmra.mxu1 %vm607_vm0, %v633_v5  ;;  %s1181_s1 = sshll.u32 %s573_s24, 4  ;;  %s1182_s1 = int_to_ptr.vmem [resolvable:$true] %s1181_s1 }
  0xaf   : > { %v620_v9 = vpop.f32.mrf.mxu0 }
  0xb0   : > { %v621_v11 = vadd.f32 %v1454_v7, %v620_v9 }
  0xb1   : > { %v667_v10 = vpop.f32.mrf.mxu1 }
  0xb2   : > { %v668_v12 = vadd.f32 %v1455_v8, %v667_v10  ;;  %v624_v13 = vpack.c.bf16 %v621_v11, %v621_v11 }
  0xb4   : > { %v671_v14 = vpack.c.bf16 %v668_v12, %v668_v12  ;;  %626 = vst.msk [vmem:[#allocation2] sm:$0xf] %vm625_vm1, %v624_v13 }
  0xb6   : > { %793 = vrot.lane.b32.xlu2 %v671_v14, %s1599_s13 }
  0xb7   : > { %v622_v15 = vpop.f32.mrf.mxu0 }
  0xb9   : > { %v669_v16 = vpop.f32.mrf.mxu1 }
  0xbb   : > { %v672_v17 = vld [vmem:[#allocation2] sm:$0xf] }
  0xbc   : > { %v791_v18 = vld [vmem:[#allocation2] sm:$0xf]  ;;  %v679_v20 = vsel %vm674_vm2, %v672_v17, 0 }
  0xbd   : > { %v726_v19 = vld [vmem:[#allocation2] sm:$0xf]  ;;  %v796_v21 = vunpack.c.l.b16 %v791_v18  ;;  %688 = vmatpush.bf16.xpose.msra.mxu2 %v679_v20 }
  0xbe   : > { %857 = vrot.lane.b32.xlu2 %v671_v14, %s1600_s14  ;;  %v732_v22 = vunpack.c.l.b16 %v726_v19  ;;  %v855_v25 = vld [vmem:[#allocation2] sm:$0xf] }
  0xbf   : > { %v797_v23 = vpack.c.b16 %v796_v21, %v796_v21  ;;  %v860_v26 = vunpack.c.l.b16 %v855_v25 }
  0xc0   : > { %v733_v24 = vpack.c.b16 %v732_v22, %v732_v22 }
  0xc1   : > { %798 = vrot.lane.b32.xlu1 %v797_v23, %s1599_s13  ;;  %v861_v27 = vpack.c.b16 %v860_v26, %v860_v26 }
  0xc2   : > { %734 = vrot.lane.b32.xlu0 %v733_v24, %s1601_s29 }
  0xc4   : > { %1306 = vmatmul.msk.bf16.vlgmr.msra.gmra.mxu2 %vm674_vm2, %v671_v14 }
  0xc6   : > { %628 = vrot.lane.b32.xlu2 %v624_v13, %s1602_s0 }
  0xc9   : > { %862 = vrot.lane.b32.xlu1 %v861_v27, %s1600_s14 }
  0xca   : > { %729 = vrot.lane.b32.xlu0 %v671_v14, %s1601_s29 }
 0x110   : > { %v794_v28 = vpop.permute.xlu2 %793 }
 0x118   : > { %v858_v29 = vpop.permute.xlu2 %857 }
 0x120   : > { %v629_v30 = vpop.permute.xlu2 %628 }
 0x121   : > { %631 = vst.msk [vmem:[#allocation3] sm:$0xf] %vm625_vm1, %v629_v30 }
 0x128   : > { %v673_v31 = vld [vmem:[#allocation3] sm:$0xf] }
 0x129   : > { %v711_v32 = vsel %vm709_vm3, %v673_v31, 0  ;;  %v727_v57 = vld [vmem:[#allocation3] sm:$0xf] }
 0x12a   : > { %720 = vmatpush.bf16.msrb.mxu0 %v711_v32  ;;  %v768_v58 = vunpack.c.l.b16 %v727_v57  ;;  %v792_v14 = vld [vmem:[#allocation3] sm:$0xf]  ;;  %v1456_v57 = vld [vmem:[%s1956_s7] ss:$0 sm:$0xff] }
 0x12b   : > { %v832_v15 = vunpack.c.l.b16 %v792_v14  ;;  %v856_v21 = vld [vmem:[#allocation3] sm:$0xf] }
 0x12c   : > { %v769_v59 = vpack.c.b16 %v768_v58, %v768_v58  ;;  %v896_v22 = vunpack.c.l.b16 %v856_v21 }
 0x12d   : > { %v833_v18 = vpack.c.b16 %v832_v15, %v832_v15 }
 0x12e   : > { %v897_v23 = vpack.c.b16 %v896_v22, %v896_v22  ;;  %v1379_v22 = vld [vmem:[%s1961_s12 + $0x18] sm:$0xff] }
 0x133   : > { %v799_v33 = vpop.permute.xlu1 %798 }
 0x134   : > { %v735_v34 = vpop.permute.xlu0 %734  ;;  %v804_v36 = vsel %vm674_vm2, %v799_v33, 0 }
 0x135   : > { %v740_v35 = vsel %vm674_vm2, %v735_v34, 0  ;;  %813 = vmatpush.bf16.xpose.msrb.mxu1 %v804_v36 }
 0x136   : > { %749 = vmatpush.bf16.xpose.msra.mxu3 %v740_v35 }
 0x13b   : > { %v863_v37 = vpop.permute.xlu1 %862 }
 0x13c   : > { %v730_v38 = vpop.permute.xlu0 %729  ;;  %1310 = vmatmul.msk.bf16.vlgmr.msrb.gmra.mxu1 %vm674_vm2, %v794_v28  ;;  %v868_v39 = vsel %vm674_vm2, %v863_v37, 0 }
 0x13d   : > { %1308 = vmatmul.msk.bf16.vlgmr.msra.gmra.mxu3 %vm674_vm2, %v730_v38 }
 0x13e   : > { %877 = vmatpush.bf16.xpose.msrb.mxu3 %v868_v39 }
 0x147   : > { %v690_v40 = vpop.f32.mrf.mxu2 }
 0x148   : > { %v694_v41 = vsel %vm674_vm2, %v690_v40, -inf }
 0x149   : > { %695 = vmax.xlane.f32.xlu0 %v694_v41 }
 0x14d   : > { %1312 = vmatmul.msk.bf16.vlgmr.msrb.gmra.mxu3 %vm674_vm2, %v858_v29 }
 0x14f   : > { %v692_v42 = vpop.f32.mrf.mxu2 }
 0x1b9   : > { %v815_v43 = vpop.f32.mrf.mxu1 }
 0x1ba   : > { %v819_v44 = vsel %vm674_vm2, %v815_v43, -inf }
 0x1bb   : > { %820 = vmax.xlane.f32.xlu2 %v819_v44 }
 0x1bc   : > { %v696_v45 = vpop.xlane.xlu0 %695 }
 0x1bd   : > { %v697_v46 = vsub.f32 %v690_v40, %v696_v45 }
 0x1bf   : > { %v698_v48 = vmul.f32 1.442695, %v697_v46 }
 0x1c0   : > { %v751_v47 = vpop.f32.mrf.mxu3 }
 0x1c1   : > { %v755_v49 = vsel %vm674_vm2, %v751_v47, -inf  ;;  %v817_v50 = vpop.f32.mrf.mxu1  ;;  %1463 = vpow2.f32 %v698_v48  ;;  %v1373_v48 = vld [vmem:[%s1955_s6 + $0x8] sm:$0xff] }
 0x1c2   : > { %756 = vmax.xlane.f32.xlu1 %v755_v49  ;;  %966 = vmatpush.bf16.msra.mxu1 %v1373_v48  ;;  %v1372_v49 = vld [vmem:[%s1955_s6] sm:$0xff] }
 0x1c6   : > { %967 = vmatpush.bf16.msra.mxu1 %v1372_v49 }
 0x1c7   : > { %v1464_v52 = vpop.eup %1463 }
 0x1c8   : > { %v753_v51 = vpop.f32.mrf.mxu3  ;;  %v700_v53 = vsel %vm674_vm2, %v1464_v52, 0.0 }
 0x1ca   : > { %701 = vadd.xlane.f32.xlu1 %v700_v53 }
 0x1d0   : > { %v879_v54 = vpop.f32.mrf.mxu3 }
 0x1d1   : > { %v883_v55 = vsel %vm674_vm2, %v879_v54, -inf }
 0x1d2   : > { %884 = vmax.xlane.f32.xlu0 %v883_v55 }
 0x1d8   : > { %v881_v56 = vpop.f32.mrf.mxu3 }
 0x1e6   : > { %770 = vrot.lane.b32.xlu0 %v769_v59, %s1601_s29  ;;  %s1992_s29 = sld [smem:[#allocation19_spill]] }
 0x22e   : > { %v821_v60 = vpop.xlane.xlu2 %820 }
 0x22f   : > { %v822_v61 = vsub.f32 %v815_v43, %v821_v60 }
 0x231   : > { %v823_v62 = vmul.f32 1.442695, %v822_v61 }
 0x233   : > { %1465 = vpow2.f32 %v823_v62 }
 0x235   : > { %v757_v63 = vpop.xlane.xlu1 %756 }
 0x236   : > { %v758_v0 = vsub.f32 %v751_v47, %v757_v63  ;;  %v1606_v63 = vmov 32.0  }
 0x238   : > { %v759_v1 = vmul.f32 1.442695, %v758_v0 }
 0x239   : > { %v1466_v2 = vpop.eup %1465 }
 0x23a   : > { %1467 = vpow2.f32 %v759_v1  ;;  %v825_v3 = vsel %vm674_vm2, %v1466_v2, 0.0 }
 0x23b   : > { %826 = vadd.xlane.f32.xlu1 %v825_v3 }
 0x23d   : > { %v702_v5 = vpop.xlane.xlu1 %701 }
 0x23e   : > { %1469 = vrcp.f32 %v702_v5 }
 0x240   : > { %v1468_v6 = vpop.eup %1467 }
 0x241   : > { %v761_v7 = vsel %vm674_vm2, %v1468_v6, 0.0 }
 0x242   : > { %762 = vadd.xlane.f32.xlu2 %v761_v7 }
 0x244   : > { %v1470_v8 = vpop.eup %1469 }
 0x245   : > { %v885_v9 = vpop.xlane.xlu0 %884  ;;  %v704_v10 = vmul.f32 %v1470_v8, %v1464_v52 }
 0x246   : > { %v886_v11 = vsub.f32 %v879_v54, %v885_v9 }
 0x247   : > { %v705_v13 = vpack.c.bf16 %v704_v10, %v704_v10 }
 0x248   : > { %v887_v12 = vmul.f32 1.442695, %v886_v11  ;;  %v1375_v11 = vld [vmem:[%s1959_s10 + $0x8] sm:$0xff] }
 0x249   : > { %1307 = vmatmul.msk.bf16.vlgmr.msrb.gmra.mxu0 %vm674_vm2, %v705_v13  ;;  %v1383_v13 = vld [vmem:[%s1961_s12 + $0x38] sm:$0xff] }
 0x24a   : > { %1471 = vpow2.f32 %v887_v12  ;;  %v1374_v12 = vld [vmem:[%s1959_s10] sm:$0xff]  ;;  %1120 = vmatpush.bf16.msra.mxu3 %v1383_v13 }
 0x250   : > { %v1472_v16 = vpop.eup %1471 }
 0x251   : > { %v889_v17 = vsel %vm674_vm2, %v1472_v16, 0.0 }
 0x252   : > { %890 = vadd.xlane.f32.xlu2 %v889_v17 }
 0x254   : > { %834 = vrot.lane.b32.xlu1 %v833_v18, %s1599_s13  ;;  %v1381_v18 = vld [vmem:[%s1961_s12 + $0x28] sm:$0xff]  ;;  %s1168_s13 = scalar_lea.sflag [#allocation6], %s1766_s30 }
 0x258   : > { %v771_v19 = vpop.permute.xlu0 %770 }
 0x259   : > { %v776_v20 = vsel %vm709_vm3, %v771_v19, 0  ;;  %v1380_v19 = vld [vmem:[%s1961_s12 + $0x20] sm:$0xff] }
 0x25a   : > { %785 = vmatpush.bf16.msra.mxu0 %v776_v20 }
 0x26a   : > { %898 = vrot.lane.b32.xlu2 %v897_v23, %s1600_s14 }
 0x2ae   : > { %v827_v25 = vpop.xlane.xlu1 %826 }
 0x2b5   : > { %v763_v24 = vpop.xlane.xlu2 %762 }
 0x2b6   : > { %1473 = vrcp.f32 %v763_v24 }
 0x2b7   : > { %1475 = vrcp.f32 %v827_v25  ;;  %v1378_v25 = vld [vmem:[%s1961_s12 + $0x10] sm:$0xff] }
 0x2bc   : > { %v1474_v26 = vpop.eup %1473 }
 0x2bd   : > { %v765_v27 = vmul.f32 %v1474_v26, %v1468_v6  ;;  %v1476_v29 = vpop.eup %1475 }
 0x2be   : > { %v829_v31 = vmul.f32 %v1476_v29, %v1466_v2 }
 0x2bf   : > { %v766_v28 = vpack.c.bf16 %v765_v27, %v765_v27 }
 0x2c0   : > { %v830_v35 = vpack.c.bf16 %v829_v31, %v829_v31 }
 0x2c1   : > { %1309 = vmatmul.msk.bf16.vlgmr.msra.gmra.mxu0 %vm674_vm2, %v766_v28  ;;  %v1457_v28 = vld [vmem:[%s1957_s8] ss:$0 sm:$0xff] }
 0x2c5   : > { %v891_v30 = vpop.xlane.xlu2 %890 }
 0x2c6   : > { %1477 = vrcp.f32 %v891_v30  ;;  %v722_v32 = vpop.f32.mrf.mxu0  ;;  %v835_v33 = vpop.permute.xlu1 %834  ;;  %v1458_v30 = vld [vmem:[%s1958_s9] ss:$0 sm:$0xff] }
 0x2c7   : > { %v840_v34 = vsel %vm709_vm3, %v835_v33, 0  ;;  %1479 = vrcp.f32 %v1606_v63  ;;  %v1461_v63 = vld [vmem:[%s1992_s29] ss:$0 sm:$0xff] }
 0x2c8   : > { %849 = vmatpush.bf16.msrb.mxu2 %v840_v34 }
 0x2cb   : > { %1311 = vmatmul.msk.bf16.vlgmr.msrb.gmra.mxu2 %vm674_vm2, %v830_v35  ;;  %v1377_v35 = vld [vmem:[%s1961_s12 + $0x8] sm:$0xff] }
 0x2cc   : > { %v1478_v36 = vpop.eup %1477  ;;  %1043 = vmatpush.bf16.msra.mxu2 %v1375_v11 }
 0x2cd   : > { %v893_v37 = vmul.f32 %v1478_v36, %v1472_v16  ;;  %v899_v38 = vpop.permute.xlu2 %898  ;;  %v1480_v0 = vpop.eup %1479  ;;  %v1382_v16 = vld [vmem:[%s1961_s12 + $0x30] sm:$0xff]  ;;  %v1376_v36 = vld [vmem:[%s1961_s12] sm:$0xff] }
 0x2ce   : > { %v904_v39 = vsel %vm709_vm3, %v899_v38, 0  ;;  %v724_v41 = vpop.f32.mrf.mxu0  ;;  %v978_v1 = vmul.f32 32.0, %v1480_v0  ;;  %vm982_vm6 = vweird.f32 %v1480_v0  ;;  %1121 = vmatpush.bf16.msra.mxu3 %v1382_v16 }
 0x2cf   : > { %v894_v40 = vpack.c.bf16 %v893_v37, %v893_v37  ;;  %913 = vmatpush.bf16.msrb.mxu0 %v904_v39  ;;  %v1459_v37 = vld [vmem:[%s1990_s18] ss:$0 sm:$0xff] }
 0x2d0   : > { %v979_v2 = vsub.f32 1.0, %v978_v1  ;;  %1044 = vmatpush.bf16.msra.mxu2 %v1374_v12 }
 0x2d2   : > { %1313 = vmatmul.msk.bf16.vlgmr.msrb.gmra.mxu0 %vm674_vm2, %v894_v40  ;;  %v980_v3 = vmul.f32 %v1480_v0, %v979_v2  ;;  %1122 = vmatpush.bf16.msra.mxu3 %v1381_v18  ;;  %v1462_v2 = vld [vmem:[%s1995_s16] ss:$0 sm:$0xff] }
 0x2d4   : > { %v981_v5 = vadd.f32 %v1480_v0, %v980_v3 }
 0x2d6   : > { %v1851_v6 = vsel %vm982_vm6, %v1480_v0, %v981_v5  ;;  %1123 = vmatpush.bf16.msra.mxu3 %v1380_v19 }
 0x2da   : > { %1124 = vmatpush.bf16.msra.mxu3 %v1379_v22 }
 0x2de   : > { %1125 = vmatpush.bf16.msra.mxu3 %v1378_v25 }
 0x2e2   : > { %1126 = vmatpush.bf16.msra.mxu3 %v1377_v35 }
 0x2e6   : > { %1127 = vmatpush.bf16.msra.mxu3 %v1376_v36 }
 0x33e   : > { %v787_v42 = vpop.f32.mrf.mxu0 }
 0x33f   : > { %920 = vrot.lane.b32.xlu0 %v787_v42, %s1603_s19 }
 0x346   : > { %v789_v43 = vpop.f32.mrf.mxu0 }
 0x347   : > { %v1460_v43 = vld [vmem:[%s1991_s25] ss:$0 sm:$0xff] }
 0x34e   : > { %v851_v44 = vpop.f32.mrf.mxu2 }
 0x34f   : > { %v915_v45 = vpop.f32.mrf.mxu0  ;;  %924 = vrot.lane.b32.xlu0 %v851_v44, %s1605_s17 }
 0x350   : > { %928 = vrot.lane.b32.xlu1 %v915_v45, %s1604_s27  ;;  %s1993_s27 = sld [smem:[#allocation21_spill]] }
 0x356   : > { %v853_v46 = vpop.f32.mrf.mxu2  ;;  %s1179_s17 = scalar_lea.hbm %s1993_s27, %s1365_s11  ;;  %s1535_s20 = scalar_lea.hbm %s1993_s27, 16 }
 0x357   : > { %v917_v47 = vpop.f32.mrf.mxu0  ;;  %s1183_s25 = sshll.u32 %s1179_s17, 4  ;;  %s1184_s25 = int_to_ptr.hbm [resolvable:$true] %s1183_s25 }
 0x358   : > { %s1529_s14 = sshra.s32 %s1184_s25, 4  ;;  %s1530_s14 = int_to_ptr.hbm [resolvable:$true] %s1529_s14 }
 0x359   : > { %s1531_s11 = scalar_lea.hbm %s1530_s14, 8  ;;  %p1536_p8 = scmp.lt.s32.totalorder %s1530_s14, %s1993_s27 }
 0x35a   : > { %p1532_p5 = scmp.ne.s32.totalorder %s1530_s14, %s1531_s11  ;;  %p1537_p10 = scmp.lt.s32.totalorder %s1535_s20, %s1531_s11 }
 0x35c   : > { %p1533_p6 = pnand %p1532_p5, %p1743_p9  ;;  %p1538_p13 = por %p1537_p10, %p1536_p8 }
 0x35e   : > { %p1534_p7 = pneg %p1533_p6 }
 0x360   : > { %p1539_p0 = pnand %p1538_p13, %p1534_p7 }
 0x3b1   : > { %v921_v50 = vpop.permute.xlu0 %920 }
 0x3b2   : > { %v931_v51 = vsel %vm674_vm2, %v722_v32, %v921_v50 }
 0x3c1   : > { %v925_v53 = vpop.permute.xlu0 %924 }
 0x3c2   : > { %v929_v52 = vpop.permute.xlu1 %928  ;;  %v933_v54 = vsel %vm932_vm4, %v931_v51, %v925_v53 }
 0x3c3   : > { %v935_v55 = vsel %vm934_vm5, %v933_v54, %v929_v52 }
 0x3c4   : > { %v936_v56 = vpack.c.bf16 %v935_v55, %v935_v55 }
 0x3c6   : > { %1322 = vmatmul.msk.bf16.vlgmr.msra.gmra.mxu1 %vm607_vm0, %v936_v56 }
 0x443   : > { %v969_v58 = vpop.f32.mrf.mxu1 }
 0x444   : > { %v970_v59 = vadd.f32 %v1456_v57, %v969_v58 }
 0x446   : > { %v973_v60 = vadd.f32 %v970_v59, %v1791_v4 }
 0x448   : > { %v974_v61 = vsel %vm607_vm0, %v973_v60, 0.0 }
 0x449   : > { %975 = vadd.xlane.f32.xlu0 %v974_v61 }
 0x44b   : > { %v971_v62 = vpop.f32.mrf.mxu1 }
 0x4bc   : > { %v976_v7 = vpop.xlane.xlu0 %975 }
 0x4bd   : > { %v984_v8 = vmul.f32 %v1851_v6, %v976_v7 }
 0x4bf   : > { %v985_v9 = vsub.f32 %v973_v60, %v984_v8 }
 0x4c1   : > { %v986_v10 = vmul.f32 %v985_v9, %v985_v9 }
 0x4c3   : > { %v987_v4 = vsel %vm607_vm0, %v986_v10, 0.0 }
 0x4c4   : > { %988 = vadd.xlane.f32.xlu2 %v987_v4 }
 0x537   : > { %v989_v14 = vpop.xlane.xlu2 %988 }
 0x538   : > { %v990_v15 = vmul.f32 %v989_v14, %v1851_v6 }
 0x53a   : > { %v991_v17 = vadd.f32 1e-05, %v990_v15 }
 0x53c   : > { %1481 = vrsqrt.f32 %v991_v17  ;;  %vm998_vm8 = vweird.f32 %v991_v17 }
 0x542   : > { %v1482_v20 = vpop.eup %1481 }
 0x543   : > { %v993_v21 = vmul.f32 %v1482_v20, %v991_v17  ;;  %vm999_vm7 = vweird.f32 %v1482_v20 }
 0x544   : > { %vm1000_vm9 = vmor %vm998_vm8, %vm999_vm7 }
 0x545   : > { %v994_v23 = vmul.f32 %v1482_v20, %v993_v21 }
 0x547   : > { %v995_v24 = vmul.f32 0.5, %v994_v23 }
 0x549   : > { %v996_v26 = vsub.f32 1.5, %v995_v24 }
 0x54b   : > { %v997_v27 = vmul.f32 %v1482_v20, %v996_v26 }
 0x54d   : > { %v1001_v29 = vsel %vm1000_vm9, %v1482_v20, %v997_v27 }
 0x54e   : > { %v1002_v31 = vmul.f32 %v1001_v29, %v985_v9 }
 0x550   : > { %v1007_v32 = vmul.f32 %v1457_v28, %v1002_v31 }
 0x552   : > { %v1012_v33 = vadd.f32 %v1458_v30, %v1007_v32 }
 0x554   : > { %v1013_v34 = vpack.c.bf16 %v1012_v33, %v1012_v33 }
 0x556   : > { %1331 = vmatmul.msk.bf16.vlgmr.msra.gmra.mxu2 %vm607_vm0, %v1013_v34 }
 0x5d9   : > { %v1046_v38 = vpop.f32.mrf.mxu2 }
 0x5da   : > { %v1047_v39 = vadd.f32 %v1459_v37, %v1046_v38 }
 0x5dc   : > { %v1050_v40 = vmax.f32 %v1047_v39, 0.0 }
 0x5de   : > { %v1051_v41 = vpack.c.bf16 %v1050_v40, %v1050_v40 }
 0x5e0   : > { %1128 = vmatmul.bf16.vlgmr.msra.gmra.mxu3 %v1051_v41 }
 0x5e1   : > { %v1048_v42 = vpop.f32.mrf.mxu2 }
 0x663   : > { %v1129_v44 = vpop.f32.mrf.mxu3 }
 0x664   : > { %v1130_v45 = vadd.f32 %v1460_v43, %v1129_v44 }
 0x666   : > { %v1133_v46 = vadd.f32 %v1130_v45, %v1012_v33 }
 0x668   : > { %v1134_v47 = vsel %vm607_vm0, %v1133_v46, 0.0 }
 0x669   : > { %1135 = vadd.xlane.f32.xlu1 %v1134_v47 }
 0x66b   : > { %v1131_v48 = vpop.f32.mrf.mxu3 }
 0x6dc   : > { %v1136_v49 = vpop.xlane.xlu1 %1135 }
 0x6dd   : > { %v1137_v50 = vmul.f32 %v1136_v49, %v1851_v6 }
 0x6df   : > { %v1138_v51 = vsub.f32 %v1133_v46, %v1137_v50 }
 0x6e1   : > { %v1139_v52 = vmul.f32 %v1138_v51, %v1138_v51 }
 0x6e3   : > { %v1140_v53 = vsel %vm607_vm0, %v1139_v52, 0.0 }
 0x6e4   : > { %1141 = vadd.xlane.f32.xlu0 %v1140_v53 }
 0x757   : > { %v1142_v54 = vpop.xlane.xlu0 %1141 }
 0x758   : > { %v1143_v55 = vmul.f32 %v1142_v54, %v1851_v6 }
 0x75a   : > { %v1144_v56 = vadd.f32 1e-05, %v1143_v55 }
 0x75c   : > { %1483 = vrsqrt.f32 %v1144_v56  ;;  %vm1151_vm11 = vweird.f32 %v1144_v56 }
 0x762   : > { %v1484_v57 = vpop.eup %1483 }
 0x763   : > { %v1146_v58 = vmul.f32 %v1484_v57, %v1144_v56  ;;  %vm1152_vm10 = vweird.f32 %v1484_v57 }
 0x764   : > { %vm1153_vm12 = vmor %vm1151_vm11, %vm1152_vm10 }
 0x765   : > { %v1147_v59 = vmul.f32 %v1484_v57, %v1146_v58 }
 0x767   : > { %v1148_v60 = vmul.f32 0.5, %v1147_v59 }
 0x769   : > { %v1149_v61 = vsub.f32 1.5, %v1148_v60 }
 0x76b   : > { %v1150_v62 = vmul.f32 %v1484_v57, %v1149_v61 }
 0x76d   : > { %v1154_v0 = vsel %vm1153_vm12, %v1484_v57, %v1150_v62 }
 0x76e   : > { %v1155_v1 = vmul.f32 %v1154_v0, %v1138_v51 }
 0x770   : > { %v1160_v3 = vmul.f32 %v1461_v63, %v1155_v1 }
 0x772   : > { %v1165_v5 = vadd.f32 %v1462_v2, %v1160_v3 }
 0x774   : > { %1166 = vst.msk [vmem:[%s573_s24] sm:$0xff] %vm607_vm0, %v1165_v5 }
 0x775   : > { %1542 = shalt.err (!%p1539_p0)
}
 0x776   : > { %1386 = dma.vmem_to_hbm [thread:$0]  (%p1743_p9), %s1182_s1, 128, %s1184_s25, %s1168_s13  }
 0x777 PF: > { %s1996_s30 = sld [smem:[#allocation10_spill]]  ;;  %p1393_p1 = pnand %p1281_p12, %p1750_p11 }
 0x779   : > { %p1394_p2 = pneg %p1393_p1 }
 0x77d   : > { %s1195_s15 = sand.u32 1, %s1996_s30  }
 0x77e   : > { %s1196_s18 = scalar_lea.sflag [#allocation6], %s1195_s15 }
 0x77f   : > { %1572 = dma.done.wait (%p1394_p2), %s1196_s18, 128  }
 0x780   : > { %1574 = vsyncadd (%p1394_p2), %s1196_s18, 4294967168  ;;  %s32_s26 = sadd.s32 1, %s1597_s26   ;;  %s1997_s16 = sld [smem:[#allocation14_spill]] }
 0x781   : > { %p29_p3 = scmp.ge.s32.totalorder %s32_s26, 4   ;;  %s1998_s24 = sld [smem:[#allocation11_spill]] }
 0x782   : > { %s1999_s25 = sld [smem:[#allocation12_spill]]  ;;  %s2000_s21 = smov %s1581_s22 }
 0x783   : > { %s2001_s22 = smov %s1585_s23  ;;  %31 = sbr.rel (!%p29_p3) target bundleno = 14 (0xe), region = 136 }
 0x786   : > { %s2002_s23 = smov %s1997_s16 }
 0x788   :  { %1202 = vsyncpa [#allocation5], 1 }
 0x789   :  { %1204 = vsyncpa [#allocation5 + $0x1], 1 }
 0x78a   :  { %1205 = vsyncpa [#allocation6], 1 }
 0x78b   :  { %1207 = vsyncpa [#allocation6 + $0x1], 1 }

</bundles_post_ra>
